<compile_context>
chip_gen: v7x
topology: tpu7x:2x2x1
jax: 0.10.0
libtpu: 0.0.40
codegen_flags: <defaults>
</compile_context>

<pallas_src>
import functools
import math
from typing import NamedTuple

import jax
import jax.numpy as jnp
from jax import lax
from jax.experimental import pallas as pl
from jax.experimental.pallas import tpu as pltpu


def _round_up(x, m):
    return ((x + m - 1) // m) * m


def _cdiv(a, b):
    return (a + b - 1) // b


def _sublane(dtype):
    return max(8, 32 // max(jnp.dtype(dtype).itemsize, 1))   # f32:8, bf16:16, i8:32


def _vmem_capacity_bytes():
    try:
        return int(pltpu.get_tpu_info().vmem_capacity_bytes)
    except Exception:
        return 64 * 1024 * 1024   # conservative fallback (v7x per-TC size)


def _maybe_buffered_spec(block_shape, index_map, buffer_count):
    """BlockSpec with deeper input pipelining when requested & supported."""
    if buffer_count and buffer_count > 2 and hasattr(pl, "Buffered"):
        try:
            return pl.BlockSpec(block_shape, index_map,
                                pipeline_mode=pl.Buffered(buffer_count))
        except TypeError:
            pass
    return pl.BlockSpec(block_shape, index_map)


class LogRegPlan(NamedTuple):
    in_feat: int
    num_class: int
    k_pad: int
    c_pad: int
    tk: int
    tc: int
    n_k: int
    n_c: int
    compute_dtype: jnp.dtype


def plan_logreg(in_feat, num_class, *, compute_dtype=jnp.bfloat16,
                max_tk=512, max_tc=2048,
                resident_weight_bytes=8 * 1024 * 1024):
    """Tile plan for the class / contraction dims (independent of batch N)."""
    compute_dtype = jnp.dtype(compute_dtype)
    itemsize = compute_dtype.itemsize

    # Class dim: lane-dense (multiple of 128); tile in >=256 chunks when large
    # so the v6e/v7x 256-wide MXU stays full and VMEM stays bounded on v7x.
    c_r = _round_up(num_class, 128)
    if c_r <= max_tc:
        tc, n_c, c_pad = c_r, 1, c_r
    else:
        n_c = _cdiv(c_r, max_tc)
        tc = _round_up(_cdiv(c_r, n_c), 256)
        n_c = _cdiv(c_r, tc)
        c_pad = n_c * tc

    # Contraction dim: keep the whole (transposed) weight resident in VMEM when
    # small (common logreg case); otherwise stream it in balanced 128-aligned
    # tiles (reduction grid axis).
    if in_feat * c_pad * itemsize <= resident_weight_bytes:
        tk, n_k, k_pad = in_feat, 1, in_feat
    else:
        n_k = _cdiv(in_feat, max_tk)
        tk = _round_up(_cdiv(in_feat, n_k), 128)
        n_k = _cdiv(in_feat, tk)
        k_pad = n_k * tk

    return LogRegPlan(in_feat, num_class, k_pad, c_pad, tk, tc, n_k, n_c,
                      compute_dtype)


def prepare_logreg_params(weight, bias, plan=None, **plan_kwargs):
    """One-time prep: transpose PyTorch-layout weight (C, K) -> (K_pad, C_pad),
    zero-pad, cast to the compute dtype; bias -> (1, C_pad) float32."""
    num_class, in_feat = weight.shape
    if plan is None:
        plan = plan_logreg(in_feat, num_class, **plan_kwargs)
    w_t = jnp.pad(weight.T.astype(plan.compute_dtype),
                  ((0, plan.k_pad - in_feat), (0, plan.c_pad - num_class)))
    b = jnp.pad(bias.reshape(1, -1).astype(jnp.float32),
                ((0, 0), (0, plan.c_pad - num_class)))
    return w_t, b, plan


# ----------------------------- kernels --------------------------------------


def _logreg_resident_kernel(x_ref, w_ref, b_ref, o_ref):
    """Fast path: whole (padded, transposed) weight resident in VMEM.
    x:(TM,K) w:(K,TC) b:(1,TC)f32 o:(TM,TC) -- single MXU matmul, no scratch."""
    o_ref[...] = (
        jnp.dot(x_ref[...], w_ref[...], preferred_element_type=jnp.float32)
        + b_ref[...]).astype(o_ref.dtype)


def _logreg_stream_kernel(x_ref, w_ref, b_ref, o_ref, acc_ref, *, k_rem, tk):
    """Streaming path: K is a reduction grid axis (last), f32 accumulator."""
    k = pl.program_id(2)

    @pl.when(k == 0)
    def _():
        acc_ref[...] = jnp.zeros_like(acc_ref)

    x = x_ref[...]
    if k_rem != tk:
        # Ragged last K tile: lanes beyond in_feat hold undefined VMEM data
        # (feats is not padded in HBM) -- zero them.  The matching weight rows
        # were zero-padded once in prepare_logreg_params.
        lim = jnp.where(k == pl.num_programs(2) - 1, k_rem, tk)
        lane = lax.broadcasted_iota(jnp.int32, x.shape, 1)
        x = jnp.where(lane < lim, x, jnp.zeros_like(x))

    acc_ref[...] += jnp.dot(x, w_ref[...], preferred_element_type=jnp.float32)

    @pl.when(k == pl.num_programs(2) - 1)
    def _():
        o_ref[...] = (acc_ref[...] + b_ref[...]).astype(o_ref.dtype)


# ----------------------------- wrapper ---------------------------------------


def logreg_apply(feats, w_t, b, plan, *, max_tm=512, min_row_tiles=2,
                 x_buffer_count=None):
    """feats: (..., in_feat); w_t/b/plan from prepare_logreg_params."""
    lead = feats.shape[:-1]
    x2d = feats.reshape(-1, feats.shape[-1])
    N, K = x2d.shape
    assert K == plan.in_feat, "in_feat mismatch"

    out_dtype = feats.dtype
    x = x2d.astype(plan.compute_dtype)
    sub = _sublane(plan.compute_dtype)

    # Balanced row tiling; feats is NOT padded -- the ragged last row block is
    # handled by Pallas masked edge blocks.  Aim for >=2 row tiles (v7x
    # megacore) when the batch allows it.
    n_r = max(_cdiv(N, max_tm), min(min_row_tiles, max(N // sub, 1)))
    if n_r <= 1:
        tm, n_r = N, 1
    else:
        tm = _round_up(_cdiv(N, n_r), sub)
        n_r = _cdiv(N, tm)
        if n_r == 1:
            tm = N

    vmem_cap = _vmem_capacity_bytes()
    if x_buffer_count is None:
        # Triple-buffer the streamed x tile on 128 MiB-VMEM parts (v5e/v6e);
        # keep double-buffering on v7x (64 MiB/TC) or in the resident path.
        x_buffer_count = 3 if (plan.n_k > 1
                               and vmem_cap >= 100 * 1024 * 1024) else 2

    x_it = jnp.dtype(plan.compute_dtype).itemsize
    o_it = jnp.dtype(out_dtype).itemsize
    footprint = (x_buffer_count * tm * plan.tk * x_it      # x tiles
                 + 2 * plan.tk * plan.tc * x_it            # W tiles
                 + 2 * plan.tc * 4                         # bias
                 + 2 * tm * plan.tc * o_it)                # out tiles
    if plan.n_k > 1:
        footprint += tm * plan.tc * 4                      # f32 accumulator
    vmem_limit = int(min(max(footprint * 5 // 4 + (1 << 20), 8 << 20),
                         vmem_cap * 3 // 4))

    # Advisory cost estimate (counts W re-reads when it streams per row tile).
    flops = 2 * N * plan.in_feat * plan.c_pad
    w_reads = n_r if (plan.n_k > 1 or plan.n_c > 1) else 1
    bytes_accessed = (plan.n_c * N * plan.in_feat * x_it
                      + w_reads * plan.k_pad * plan.c_pad * x_it
                      + N * plan.c_pad * o_it
                      + plan.c_pad * 4)
    cost = pl.CostEstimate(flops=flops, transcendentals=0,
                           bytes_accessed=bytes_accessed)

    if plan.n_k == 1:
        # Resident-weight fast path: no K axis, no scratch, dot + bias direct.
        grid = (n_r, plan.n_c)
        in_specs = [
            _maybe_buffered_spec((tm, plan.in_feat), lambda i, j: (i, 0),
                                 x_buffer_count),
            pl.BlockSpec((plan.k_pad, plan.tc), lambda i, j: (0, j)),
            pl.BlockSpec((1, plan.tc), lambda i, j: (0, j)),
        ]
        out_spec = pl.BlockSpec((tm, plan.tc), lambda i, j: (i, j))
        scratch = []
        kernel = _logreg_resident_kernel
        dims = ("parallel", "parallel")
    else:
        k_rem = plan.in_feat - (plan.n_k - 1) * plan.tk
        grid = (n_r, plan.n_c, plan.n_k)
        in_specs = [
            _maybe_buffered_spec((tm, plan.tk), lambda i, j, k: (i, k),
                                 x_buffer_count),
            pl.BlockSpec((plan.tk, plan.tc), lambda i, j, k: (k, j)),
            pl.BlockSpec((1, plan.tc), lambda i, j, k: (0, j)),
        ]
        out_spec = pl.BlockSpec((tm, plan.tc), lambda i, j, k: (i, j))
        scratch = [pltpu.VMEM((tm, plan.tc), jnp.float32)]
        kernel = functools.partial(_logreg_stream_kernel,
                                   k_rem=k_rem, tk=plan.tk)
        dims = ("parallel", "parallel", "arbitrary")

    out = pl.pallas_call(
        kernel,
        out_shape=jax.ShapeDtypeStruct((N, plan.c_pad), out_dtype),
        grid_spec=pltpu.PrefetchScalarGridSpec(
            num_scalar_prefetch=0,
            grid=grid,
            in_specs=in_specs,
            out_specs=out_spec,
            scratch_shapes=scratch),
        compiler_params=pltpu.CompilerParams(
            dimension_semantics=dims,
            vmem_limit_bytes=vmem_limit),
        cost_estimate=cost,
    )(x, w_t, b)

    if plan.c_pad != plan.num_class:
        out = out[:, :plan.num_class]
    return out.reshape(*lead, plan.num_class)


def logreg_forward(feats, weight, bias, *, compute_dtype=jnp.bfloat16,
                   **apply_kwargs):
    """PyTorch nn.Linear forward: y = feats @ weight.T + bias.
    weight: (num_class, in_feat) PyTorch layout; bias: (num_class,).
    # TODO(synk): in production call prepare_logreg_params once at module init
    # and reuse (w_t, b, plan) across forward calls instead of re-prepping here.
    """
    w_t, b, plan = prepare_logreg_params(weight, bias,
                                         compute_dtype=compute_dtype)
    return logreg_apply(feats, w_t, b, plan, **apply_kwargs)


def init_logreg_params(key, in_feat, num_class, dtype=jnp.float32):
    # Matches torch.nn.init.xavier_uniform_ on weight (num_class, in_feat)
    # and bias.fill_(0.0).
    limit = math.sqrt(6.0 / (in_feat + num_class))
    weight = jax.random.uniform(
        key, (num_class, in_feat), dtype=dtype, minval=-limit, maxval=limit)
    bias = jnp.zeros((num_class,), dtype=dtype)
    return weight, bias


if __name__ == "__main__":
    key = jax.random.PRNGKey(0)
    k_x, k_w, k_x2, k_w2, k_b2 = jax.random.split(key, 5)

    # --- Test 1: small module shapes, f32 compute, resident-weight fast path.
    N, in_feat, num_class = 8, 32, 16
    feats = jax.random.normal(k_x, (N, in_feat), dtype=jnp.float32)
    weight, bias = init_logreg_params(k_w, in_feat, num_class)
    out = logreg_forward(feats, weight, bias, compute_dtype=jnp.float32)
    out = jax.block_until_ready(out)
    ref = feats @ weight.T + bias
    assert out.shape == (N, num_class)
    assert jnp.allclose(out, ref, atol=1e-5, rtol=1e-5)

    # --- Test 2: ragged batch / in_feat / classes, bf16 compute, forced
    # K-streaming path (exercises balanced tiles, masked edge blocks and the
    # in-kernel ragged-K mask).
    N2, K2, C2 = 300, 600, 200
    feats2 = jax.random.normal(k_x2, (N2, K2), dtype=jnp.float32)
    weight2, _ = init_logreg_params(k_w2, K2, C2)
    bias2 = 0.1 * jax.random.normal(k_b2, (C2,), dtype=jnp.float32)
    w_t2, b2, plan2 = prepare_logreg_params(
        weight2, bias2, compute_dtype=jnp.bfloat16,
        max_tk=256, resident_weight_bytes=0)   # force streaming path
    out2 = logreg_apply(feats2, w_t2, b2, plan2, max_tm=128)
    out2 = jax.block_until_ready(out2)
    ref2 = feats2 @ weight2.T + bias2
    assert out2.shape == (N2, C2)
    assert jnp.allclose(out2, ref2, atol=5e-2, rtol=5e-2)  # bf16 inputs, f32 acc

    print("KERNEL_OK")
</pallas_src>

<mosaic_0001>
module attributes {stable_mosaic.version = 11 : i64} {
  func.func @_logreg_resident_kernel(%arg0: i32, %arg1: i32, %arg2: memref<8x32xf32, #tpu.memory_space<vmem>>, %arg3: memref<32x128xf32, #tpu.memory_space<vmem>>, %arg4: memref<1x128xf32, #tpu.memory_space<vmem>>, %arg5: memref<8x128xf32, #tpu.memory_space<vmem>>) attributes {dimension_semantics = [#tpu.dimension_semantics<parallel>, #tpu.dimension_semantics<parallel>], iteration_bounds = array<i64: 1, 1>, scalar_prefetch = 0 : i64, scratch_operands = 0 : i64, tpu.core_type = #tpu.core_type<tc>, window_params = [{transform_indices = @transform_0, window_bounds = array<i64: 8, 32>}, {transform_indices = @transform_1, window_bounds = array<i64: 32, 128>}, {transform_indices = @transform_2, window_bounds = array<i64: 1, 128>}, {transform_indices = @transform_3, window_bounds = array<i64: 8, 128>}]} {
    %c0 = arith.constant 0 : index
    %c0_0 = arith.constant 0 : index
    %0 = vector.load %arg2[%c0, %c0_0] : memref<8x32xf32, #tpu.memory_space<vmem>>, vector<8x32xf32>
    %c0_1 = arith.constant 0 : index
    %c0_2 = arith.constant 0 : index
    %1 = vector.load %arg3[%c0_1, %c0_2] : memref<32x128xf32, #tpu.memory_space<vmem>>, vector<32x128xf32>
    %cst = arith.constant dense<0.000000e+00> : vector<8x128xf32>
    %2 = tpu.matmul %0, %1, %cst {dimension_numbers = #tpu.dot_dimension_numbers<[1], [0], [0], [1], [0, 0, 1, 1], [], []>} : vector<8x32xf32>, vector<32x128xf32>, vector<8x128xf32> -> vector<8x128xf32>
    %c0_3 = arith.constant 0 : index
    %c0_4 = arith.constant 0 : index
    %3 = vector.load %arg4[%c0_3, %c0_4] : memref<1x128xf32, #tpu.memory_space<vmem>>, vector<1x128xf32>
    %4 = vector.broadcast %3 : vector<1x128xf32> to vector<8x128xf32>
    %5 = arith.addf %2, %4 : vector<8x128xf32>
    %c0_5 = arith.constant 0 : index
    %c0_6 = arith.constant 0 : index
    %6 = vector.load %arg5[%c0_5, %c0_6] : memref<8x128xf32, #tpu.memory_space<vmem>>, vector<8x128xf32>
    tpu.vector_store %arg5[%c0_5, %c0_6], %5 {strides = array<i32>} : memref<8x128xf32, #tpu.memory_space<vmem>>, vector<8x128xf32>,
    return
  }
  func.func @transform_0(%arg0: i32, %arg1: i32) -> (i32, i32) {
    %c0_i32 = arith.constant 0 : i32
    %c0_i32_0 = arith.constant 0 : i32
    return %arg0, %c0_i32 : i32, i32
  }
  func.func @transform_1(%arg0: i32, %arg1: i32) -> (i32, i32) {
    %c0_i32 = arith.constant 0 : i32
    %c0_i32_0 = arith.constant 0 : i32
    return %c0_i32, %arg1 : i32, i32
  }
  func.func @transform_2(%arg0: i32, %arg1: i32) -> (i32, i32) {
    %c0_i32 = arith.constant 0 : i32
    %c0_i32_0 = arith.constant 0 : i32
    return %c0_i32, %arg1 : i32, i32
  }
  func.func @transform_3(%arg0: i32, %arg1: i32) -> (i32, i32) {
    %c0_i32 = arith.constant 0 : i32
    return %arg0, %arg1 : i32, i32
  }
}

</mosaic_0001>

<bundles_post_ra>
// kernel: tpu_custom_call.1
= control target key start
LH: loop header
LB: loop body
LE: loop exit
PB: predicated region body
PF: predicated region fallthrough
CT: control target
= control target key end

     0   :  { %8 = vsyncpa [#allocation3], 0  ;;  %s322_s0 = inlined_call_operand.hbm [shape: f32[8,32], index: 0, kind: input, shape index: {}]   ;;  %s323_s1 = inlined_call_operand.hbm [shape: f32[32,128], index: 1, kind: input, shape index: {}]   ;;  %s324_s2 = inlined_call_operand.vmem [shape: f32[1,128], index: 2, kind: input, shape index: {}]   ;;  %s325_s3 = inlined_call_operand.hbm [shape: f32[8,128], index: 3, kind: output, shape index: {}]  }
   0x1   :  { %9 = vsyncpa [#allocation6], 0 }
   0x2   :  { %10 = vsyncpa [#allocation4], 0  ;;  %s248_s12 = smov [#allocation2]   ;;  %s249_s14 = smov [#allocation5]  }
   0x3   :  { %s17_s13 = sshll.u32 %s248_s12, 4  ;;  %s26_s15 = sshll.u32 %s249_s14, 4  ;;  %s18_s13 = int_to_ptr.vmem [resolvable:$true] %s17_s13  ;;  %s276_s15 = int_to_ptr.vmem [resolvable:$true] %s26_s15 }
   0x4   :  { %s176_s18 = scalar_lea.hbm %s322_s0, 128 }
   0x5   :  { %p177_p0 = scmp.ne.s32.totalorder %s322_s0, %s176_s18  ;;  %p180_p1 = scmp.lt.u32.totalorder %s176_s18, %s322_s0 }
   0x7   :  { %p182_p2 = pnand %p180_p1, %p177_p0 }
   0x9   :  { %185 = shalt.err (!%p182_p2)
}
   0xa   :  { %s186_s23 = scalar_lea.vmem %s18_s13, 128  ;;  %p191_p4 = scmp.lt.s32.totalorder %s18_s13, %s18_s13 }
   0xb   :  { %p187_p3 = scmp.ne.s32.totalorder %s18_s13, %s186_s23  ;;  %p192_p5 = scmp.lt.s32.totalorder %s186_s23, %s186_s23 }
   0xd   :  { %p193_p6 = por %p192_p5, %p191_p4 }
   0xf   :  { %p194_p7 = pnand %p193_p6, %p187_p3 }
  0x11   :  { %197 = shalt.err (!%p194_p7)
}
  0x12   :  { %20 = dma.hbm_to_vmem [thread:$0]  %s322_s0, 128, %s18_s13, [#allocation3]  }
  0x13   :  { %s198_s28 = scalar_lea.hbm %s323_s1, 512 }
  0x14   :  { %p199_p8 = scmp.ne.s32.totalorder %s323_s1, %s198_s28  ;;  %p202_p9 = scmp.lt.u32.totalorder %s198_s28, %s323_s1 }
  0x16   :  { %p204_p10 = pnand %p202_p9, %p199_p8 }
  0x18   :  { %207 = shalt.err (!%p204_p10)
}
  0x19   :  { %s208_s6 = scalar_lea.vmem %s276_s15, 512  ;;  %p213_p12 = scmp.lt.s32.totalorder %s276_s15, %s276_s15 }
  0x1a   :  { %p209_p11 = scmp.ne.s32.totalorder %s276_s15, %s208_s6  ;;  %p214_p13 = scmp.lt.s32.totalorder %s208_s6, %s208_s6 }
  0x1c   :  { %p215_p0 = por %p214_p13, %p213_p12 }
  0x1e   :  { %p216_p1 = pnand %p215_p0, %p209_p11 }
  0x20   :  { %219 = shalt.err (!%p216_p1)
}
  0x21   :  { %s250_s0 = smov 128   ;;  %s251_s7 = smov 8  }
  0x22   :  { %32 = dma.hbm_to_vmem [thread:$0]  %s323_s1, 512, %s276_s15, [#allocation6], %s250_s0, %s250_s0, %s251_s7  }
  0x23   :  { %242 = dma.done.wait [#allocation3], 128  }
  0x24   :  { %243 = vsyncadd [#allocation3], 4294967168 }
  0x25   :  { %244 = dma.done.wait [#allocation6], 512  }
  0x26   :  { %245 = vsyncadd [#allocation6], 4294966784  ;;  %v252_v0 = vmov 0.0|0.0   ;;  %vm253_vm0 = vmmov 0   ;;  %v254_v1 = vmov 0.0   ;;  %v42_v2 = vld [vmem:[#allocation5] sm:$0xff] }
  0x27   :  { %162 = vmatprep.subr.bf16.mxu0 %v252_v0  ;;  %159 = vmatprep.mubr.msk.f32.mxu0 %vm253_vm0, %v254_v1  ;;  %v43_v3 = vld [vmem:[#allocation5 + $0x8] sm:$0xff]  ;;  %v44_v4 = vld [vmem:[#allocation5 + $0x10] sm:$0xff]  ;;  %v45_v6 = vld [vmem:[#allocation5 + $0x18] sm:$0xff]  ;;  %vm53_vm1 = vcmask 261120   ;;  %s255_s11 = smov [#allocation7]  }
  0x28   :  { %v163_v5 = vpack.c.bf16 %v43_v3, %v42_v2  ;;  %v166_v7 = vpack.c.bf16 %v45_v6, %v44_v4  ;;  %v41_v8 = vld [vmem:[#allocation2] sm:$0xff]  ;;  %s134_s12 = sshll.u32 %s255_s11, 4  ;;  %s135_s12 = int_to_ptr.vmem [resolvable:$true] %s134_s12 }
  0x29   :  { %v144_v9 = vld [vmem:[%s324_s2] ss:$0 sm:$0xff]  ;;  %s220_s13 = scalar_lea.vmem %s135_s12, 128  ;;  %p225_p3 = scmp.lt.s32.totalorder %s135_s12, %s135_s12 }
  0x2a   :  { %164 = vmatpush3.bf16.msra.mxu0 %v163_v5  ;;  %p221_p2 = scmp.ne.s32.totalorder %s135_s12, %s220_s13  ;;  %p226_p4 = scmp.lt.s32.totalorder %s220_s13, %s220_s13 }
  0x2b   :  { %165 = vmatprep.subr.bf16.mxu0 %v252_v0 }
  0x2c   :  { %p227_p5 = por %p226_p4, %p225_p3 }
  0x2e   :  { %167 = vmatpush3.bf16.msra.mxu0 %v166_v7  ;;  %p228_p6 = pnand %p227_p5, %p221_p2 }
  0x31   :  { %160 = vmatmul.mubr.msk.f32.vlgmr.msra.gmra.mrb[0].mxu0 %vm53_vm1, %v41_v8 }
 0x104   :  { %v123_v10 = vpop.f32.mrb[0].mxu0 }
 0x105   :  { %v124_v11 = vadd.f32 %v144_v9, %v123_v10  ;;  %v161_v12 = vpop.f32.mrb[1].mxu0 }
 0x107   :  { %127 = vst [vmem:[#allocation7] sm:$0xff] %v124_v11 }
 0x108   :  { %231 = shalt.err (!%p228_p6)
}
 0x109   :  { %s232_s16 = scalar_lea.hbm %s325_s3, 128 }
 0x10a   :  { %p233_p7 = scmp.ne.s32.totalorder %s325_s3, %s232_s16  ;;  %p236_p8 = scmp.lt.u32.totalorder %s232_s16, %s325_s3 }
 0x10c   :  { %p238_p9 = pnand %p236_p8, %p233_p7 }
 0x10e   :  { %241 = shalt.err (!%p238_p9)
}
 0x10f   :  { %137 = dma.vmem_to_hbm [thread:$0]  %s135_s12, 128, %s325_s3, [#allocation4]  }
 0x110   :  { %246 = dma.done.wait [#allocation4], 128  }
 0x111   :  { %247 = vsyncadd [#allocation4], 4294967168 }
 0x112   :  { %141 = vsyncpa [#allocation3], 1 }
 0x113   :  { %142 = vsyncpa [#allocation6], 1 }
 0x114   :  { %143 = vsyncpa [#allocation4], 1 }

</bundles_post_ra>
